<compile_context>
chip_gen: v5e
topology: v5e:2x2
jax: 0.10.0
libtpu: 0.0.40
codegen_flags: <defaults>
</compile_context>

<pallas_src>
import functools

import numpy as np
import jax
import jax.numpy as jnp
from jax.experimental import pallas as pl
from jax.experimental.pallas import tpu as pltpu


_LN_EPS = 1e-12


def _round_up(x, m):
    return ((x + m - 1) // m) * m


def _cdiv(a, b):
    return (a + b - 1) // b


def _itemsize(dt):
    return np.dtype(dt).itemsize


def _gelu_tanh(x):
    # tanh-approximate GELU (elementary ops only, guaranteed Mosaic lowering).
    # TODO(synk): FARM's ACT2FN["gelu"] is the exact erf-GELU; the tanh approximation
    # used here deviates by at most ~3e-4 in absolute value.
    c = 0.7978845608028654  # sqrt(2/pi)
    return 0.5 * x * (1.0 + jnp.tanh(c * (x + 0.044715 * (x * x * x))))


# --------------------------------------------------------------------------- #
# Device / tiling heuristics
# --------------------------------------------------------------------------- #

def _device_vmem_bytes():
    try:
        return int(pltpu.get_tpu_info().vmem_capacity_bytes)
    except Exception:
        return 128 << 20  # v5e/v6e physical VMEM


def _num_tensorcores():
    try:
        return max(1, int(getattr(pltpu.get_tpu_info(), "num_cores", 1)))
    except Exception:
        return 1


def _default_tiles():
    # v7x has only 64 MiB VMEM per TensorCore -> trim the vocab tile; v5e/v6e have 128 MiB.
    if _device_vmem_bytes() <= (64 << 20):
        return 2048, 1024
    return 2048, 2048


def _pick_vocab_tile(V, tn_max):
    """Largest lane-dense (multiple of 128) vocab tile <= tn_max that minimizes padding of
    round_up(V, 128) (e.g. V=30522 -> Vp=30720 with tn in {1024, 1536, 2048})."""
    V128 = _round_up(V, 128)
    tn_max = max(128, (int(tn_max) // 128) * 128)
    if V128 <= tn_max:
        return V128, V128
    best = None
    for tn in range(128, tn_max + 1, 128):
        Vp = _round_up(V128, tn)
        key = (Vp, -tn)           # minimize padding first, then prefer the larger tile
        if best is None or key < best[0]:
            best = (key, tn, Vp)
    return best[1], best[2]


def _pick_row_tile(M, tm_max, min_row_tiles=1):
    """Row tile that minimizes row padding (multiple of 16 for bf16 sublane packing) while
    honoring a minimum number of row tiles (megacore sharding on v7x)."""
    tm_max = max(16, (int(tm_max) // 16) * 16)
    n_tiles = max(int(min_row_tiles), _cdiv(M, tm_max))
    tm_eff = _round_up(_cdiv(M, n_tiles), 16)
    return min(tm_eff, _round_up(M, 16))


def _vmem_limit_bytes(tm, tn, H, c_size, o_size):
    """Scoped-VMEM budget = double-buffered tile footprint + headroom, capped below physical."""
    footprint = (
        2 * tm * H * c_size        # activations row tile (double-buffered)
        + 2 * H * H * c_size       # dense weight (resident, constant index_map)
        + 2 * H * tn * c_size      # decoder weight vocab tile
        + 2 * tm * tn * o_size     # logits tile
        + tm * H * c_size          # h scratch (single)
        + 8 * (3 * H + tn) * 4     # small f32 vectors (bias/gamma/beta/vocab-bias), padded
    )
    phys = _device_vmem_bytes()
    limit = max(footprint + (16 << 20), 32 << 20)   # headroom for compiler scratch/spills
    limit = min(limit, phys - (8 << 20))
    return int(limit)


# --------------------------------------------------------------------------- #
# Kernel
# --------------------------------------------------------------------------- #

def _bert_lm_head_kernel(x_ref, wd_ref, bd_ref, g_ref, beta_ref,
                         wdec_ref, bdec_ref, o_ref, h_ref):
    """One (row-tile i, vocab-tile j) grid step.

    x_ref    : (tm, H)  bf16   activations row tile
    wd_ref   : (H, H)   bf16   dense weight (resident, constant index_map)
    bd_ref   : (1, H)   f32    dense bias
    g_ref    : (1, H)   f32    LayerNorm gamma
    beta_ref : (1, H)   f32    LayerNorm beta
    wdec_ref : (H, tn)  bf16   decoder weight, vocab tile
    bdec_ref : (1, tn)  f32    vocab bias tile
    o_ref    : (tm, tn)        logits tile (out_dtype)
    h_ref    : (tm, H)  bf16   VMEM scratch: transformed hidden states
    """
    j = pl.program_id(1)

    # Dense -> GELU -> LayerNorm computed once per row tile, cached in VMEM scratch
    # while the decoder weight streams over vocab tiles (inner grid axis).
    @pl.when(j == 0)
    def _():
        h = jnp.dot(x_ref[...], wd_ref[...], preferred_element_type=jnp.float32)
        h = h + bd_ref[...]
        h = _gelu_tanh(h)
        mean = jnp.mean(h, axis=-1, keepdims=True)
        centered = h - mean
        var = jnp.mean(centered * centered, axis=-1, keepdims=True)
        # Note: padded rows are all-zero -> var == 0; eps keeps rsqrt finite and those
        # rows collapse to `beta`. They are sliced off in the wrapper, so this is benign.
        h = centered * jax.lax.rsqrt(var + _LN_EPS)
        h = h * g_ref[...] + beta_ref[...]
        h_ref[...] = h.astype(h_ref.dtype)

    # Vocab projection for this tile, f32 accumulation on the MXU.
    logits = jnp.dot(h_ref[...], wdec_ref[...], preferred_element_type=jnp.float32)
    o_ref[...] = (logits + bdec_ref[...]).astype(o_ref.dtype)


@functools.partial(
    jax.jit,
    static_argnames=("tm_eff", "tn_eff", "vocab", "compute_dtype", "out_dtype"))
def _bert_lm_head_forward(x, wd, bd, g, beta, wdec, bdec, *,
                          tm_eff, tn_eff, vocab, compute_dtype, out_dtype):
    B, S, H = x.shape
    Vp = wdec.shape[1]
    M = B * S
    Mp = _round_up(M, tm_eff)

    x2d = x.reshape(M, H).astype(compute_dtype)
    if Mp != M:
        x2d = jnp.pad(x2d, ((0, Mp - M), (0, 0)))

    grid = (Mp // tm_eff, Vp // tn_eff)
    c_size = _itemsize(compute_dtype)
    o_size = _itemsize(out_dtype)

    cost = pl.CostEstimate(
        flops=2 * Mp * H * H + 2 * Mp * H * Vp,
        transcendentals=Mp * H,
        bytes_accessed=int(
            Mp * H * c_size                    # activations (read once)
            + H * H * c_size                   # resident dense weight
            + H * Vp * c_size * grid[0]        # decoder weight streamed once per row tile
            + (3 * H + Vp) * 4                 # small f32 vectors
            + Mp * Vp * o_size),               # logits writeback
    )

    out = pl.pallas_call(
        _bert_lm_head_kernel,
        out_shape=jax.ShapeDtypeStruct((Mp, Vp), out_dtype),
        grid_spec=pltpu.PrefetchScalarGridSpec(
            num_scalar_prefetch=0,
            grid=grid,
            in_specs=[
                pl.BlockSpec((tm_eff, H), lambda i, j: (i, 0)),   # activations (row tile)
                pl.BlockSpec((H, H), lambda i, j: (0, 0)),        # dense weight (resident)
                pl.BlockSpec((1, H), lambda i, j: (0, 0)),        # dense bias
                pl.BlockSpec((1, H), lambda i, j: (0, 0)),        # LN gamma
                pl.BlockSpec((1, H), lambda i, j: (0, 0)),        # LN beta
                pl.BlockSpec((H, tn_eff), lambda i, j: (0, j)),   # decoder weight (vocab tile)
                pl.BlockSpec((1, tn_eff), lambda i, j: (0, j)),   # vocab bias tile
            ],
            out_specs=pl.BlockSpec((tm_eff, tn_eff), lambda i, j: (i, j)),
            scratch_shapes=[pltpu.VMEM((tm_eff, H), compute_dtype)],
        ),
        compiler_params=pltpu.CompilerParams(
            dimension_semantics=("parallel", "arbitrary"),
            vmem_limit_bytes=_vmem_limit_bytes(tm_eff, tn_eff, H, c_size, o_size),
        ),
        cost_estimate=cost,
    )(x2d, wd, bd, g, beta, wdec, bdec)

    return out[:M, :vocab].reshape(B, S, vocab)


# --------------------------------------------------------------------------- #
# User-facing head: one-time weight preparation + per-call forward
# --------------------------------------------------------------------------- #

class BertLMHeadPallas:
    """Forward of FARM BertLMHead. Weights are input-major ([in, out] == torch W.T).

    Weights are cast to `compute_dtype` and vocab-padded ONCE at construction (not per
    forward), per the perf review.
    """

    def __init__(self, dense_w, dense_b, ln_gamma, ln_beta, decoder_w, decoder_bias, *,
                 tm=None, tn=None, compute_dtype=jnp.bfloat16,
                 out_dtype=jnp.float32, min_row_tiles=None):
        H = dense_w.shape[0]
        V = decoder_w.shape[1]
        d_tm, d_tn = _default_tiles()
        self._tm_max = int(tm) if tm is not None else d_tm
        tn_max = int(tn) if tn is not None else d_tn
        self._tn_eff, Vp = _pick_vocab_tile(V, tn_max)
        self._H, self._V = H, V
        self._compute_dtype = compute_dtype
        self._out_dtype = out_dtype
        if min_row_tiles is None:
            # On v7x, >= 2 row tiles keeps both TensorCores busy (row axis is "parallel").
            min_row_tiles = min(2, _num_tensorcores())
        self._min_row_tiles = max(1, int(min_row_tiles))

        self.dense_w = jnp.asarray(dense_w, compute_dtype)
        self.dense_b = jnp.asarray(dense_b, jnp.float32).reshape(1, H)
        self.ln_gamma = jnp.asarray(ln_gamma, jnp.float32).reshape(1, H)
        self.ln_beta = jnp.asarray(ln_beta, jnp.float32).reshape(1, H)
        wdec = jnp.asarray(decoder_w, compute_dtype)
        bdec = jnp.asarray(decoder_bias, jnp.float32).reshape(1, V)
        if Vp != V:
            wdec = jnp.pad(wdec, ((0, 0), (0, Vp - V)))
            bdec = jnp.pad(bdec, ((0, 0), (0, Vp - V)))
        self.decoder_w = wdec
        self.decoder_bias = bdec

    def __call__(self, x):
        B, S, H = x.shape
        assert H == self._H, "hidden size mismatch"
        tm_eff = _pick_row_tile(B * S, self._tm_max, self._min_row_tiles)
        return _bert_lm_head_forward(
            x, self.dense_w, self.dense_b, self.ln_gamma, self.ln_beta,
            self.decoder_w, self.decoder_bias,
            tm_eff=tm_eff, tn_eff=self._tn_eff, vocab=self._V,
            compute_dtype=self._compute_dtype, out_dtype=self._out_dtype)


# --------------------------------------------------------------------------- #
# Reference + self-test
# --------------------------------------------------------------------------- #

def _reference_forward(x, dense_w, dense_b, ln_gamma, ln_beta,
                       decoder_w, decoder_bias, compute_dtype=jnp.bfloat16):
    """Pure-JAX reference with the same bf16/f32 numerics as the kernel."""
    B, S, H = x.shape
    xc = x.reshape(-1, H).astype(compute_dtype)
    h = jnp.dot(xc, dense_w.astype(compute_dtype),
                preferred_element_type=jnp.float32) + dense_b.astype(jnp.float32)
    h = _gelu_tanh(h)
    mean = jnp.mean(h, axis=-1, keepdims=True)
    centered = h - mean
    var = jnp.mean(centered * centered, axis=-1, keepdims=True)
    h = centered * jax.lax.rsqrt(var + _LN_EPS)
    h = h * ln_gamma.astype(jnp.float32) + ln_beta.astype(jnp.float32)
    h = h.astype(compute_dtype)
    logits = jnp.dot(h, decoder_w.astype(compute_dtype),
                     preferred_element_type=jnp.float32) + decoder_bias.astype(jnp.float32)
    return logits.reshape(B, S, -1)


def init_params(key, hidden, vocab, dtype=jnp.float32):
    """nn.Linear-style init; weights stored input-major ([in, out] == torch W.T)."""
    k = jax.random.split(key, 5)
    bound = 1.0 / (hidden ** 0.5)
    dense_w = jax.random.uniform(k[0], (hidden, hidden), dtype, -bound, bound)
    dense_b = jax.random.uniform(k[1], (hidden,), dtype, -bound, bound)
    ln_gamma = jnp.ones((hidden,), dtype) + 0.1 * jax.random.normal(k[2], (hidden,), dtype)
    ln_beta = 0.1 * jax.random.normal(k[3], (hidden,), dtype)
    decoder_w = jax.random.uniform(k[4], (hidden, vocab), dtype, -bound, bound)
    # The module inits self.bias = zeros(vocab); use nonzero values so the bias-add
    # path is actually exercised by the check.
    decoder_bias = 0.01 * jnp.arange(vocab, dtype=dtype)
    return dense_w, dense_b, ln_gamma, ln_beta, decoder_w, decoder_bias


if __name__ == "__main__":
    # Small shapes consistent with the module (hidden-size transform + vocab projection).
    batch, seq, hidden, vocab = 2, 16, 128, 384

    key = jax.random.PRNGKey(0)
    kx, kp = jax.random.split(key)
    x = jax.random.normal(kx, (batch, seq, hidden), jnp.float32)
    params = init_params(kp, hidden, vocab)

    ref = _reference_forward(x, *params)

    # Default (large-tile, device-aware) configuration.
    head = BertLMHeadPallas(*params)
    logits = head(x)
    jax.block_until_ready(logits)
    assert logits.shape == (batch, seq, vocab)
    assert logits.dtype == jnp.float32
    err = float(jnp.max(jnp.abs(logits - ref)))
    assert jnp.allclose(logits, ref, atol=1e-2, rtol=1e-2), f"max abs diff = {err}"

    # Multi-tile configuration (2 row tiles x 3 vocab tiles) to exercise the
    # pl.when(j == 0) h-caching across vocab tiles and multiple row tiles.
    head_tiled = BertLMHeadPallas(*params, tm=16, tn=128, min_row_tiles=2)
    logits_tiled = head_tiled(x)
    jax.block_until_ready(logits_tiled)
    err2 = float(jnp.max(jnp.abs(logits_tiled - ref)))
    assert jnp.allclose(logits_tiled, ref, atol=1e-2, rtol=1e-2), f"max abs diff = {err2}"

    print("KERNEL_OK")
</pallas_src>

<mosaic_0001>
module attributes {stable_mosaic.version = 11 : i64} {
  func.func @_bert_lm_head_kernel(%arg0: i32, %arg1: i32, %arg2: memref<32x128xbf16, #tpu.memory_space<vmem>>, %arg3: memref<128x128xbf16, #tpu.memory_space<vmem>>, %arg4: memref<1x128xf32, #tpu.memory_space<vmem>>, %arg5: memref<1x128xf32, #tpu.memory_space<vmem>>, %arg6: memref<1x128xf32, #tpu.memory_space<vmem>>, %arg7: memref<128x384xbf16, #tpu.memory_space<vmem>>, %arg8: memref<1x384xf32, #tpu.memory_space<vmem>>, %arg9: memref<32x384xf32, #tpu.memory_space<vmem>>, %arg10: memref<32x128xbf16, #tpu.memory_space<vmem>>) attributes {dimension_semantics = [#tpu.dimension_semantics<parallel>, #tpu.dimension_semantics<arbitrary>], iteration_bounds = array<i64: 1, 1>, scalar_prefetch = 0 : i64, scratch_operands = 1 : i64, tpu.core_type = #tpu.core_type<tc>, window_params = [{transform_indices = @transform_0, window_bounds = array<i64: 32, 128>}, {pipeline_mode = #tpu.pipeline_mode<synchronous>, transform_indices = @transform_1, window_bounds = array<i64: 128, 128>}, {pipeline_mode = #tpu.pipeline_mode<synchronous>, transform_indices = @transform_2, window_bounds = array<i64: 1, 128>}, {pipeline_mode = #tpu.pipeline_mode<synchronous>, transform_indices = @transform_3, window_bounds = array<i64: 1, 128>}, {pipeline_mode = #tpu.pipeline_mode<synchronous>, transform_indices = @transform_4, window_bounds = array<i64: 1, 128>}, {transform_indices = @transform_5, window_bounds = array<i64: 128, 384>}, {transform_indices = @transform_6, window_bounds = array<i64: 1, 384>}, {transform_indices = @transform_7, window_bounds = array<i64: 32, 384>}]} {
    %c0_i32 = arith.constant 0 : i32
    %0 = arith.cmpi eq, %arg1, %c0_i32 : i32
    %1 = arith.extui %0 : i1 to i32
    %c0_i32_0 = arith.constant 0 : i32
    %2 = arith.cmpi ne, %1, %c0_i32_0 : i32
    scf.if %2 {
      %c0_8 = arith.constant 0 : index
      %c0_9 = arith.constant 0 : index
      %10 = vector.load %arg2[%c0_8, %c0_9] : memref<32x128xbf16, #tpu.memory_space<vmem>>, vector<32x128xbf16>
      %c0_10 = arith.constant 0 : index
      %c0_11 = arith.constant 0 : index
      %11 = vector.load %arg3[%c0_10, %c0_11] : memref<128x128xbf16, #tpu.memory_space<vmem>>, vector<128x128xbf16>
      %cst_12 = arith.constant dense<0.000000e+00> : vector<32x128xf32>
      %12 = tpu.matmul %10, %11, %cst_12 {dimension_numbers = #tpu.dot_dimension_numbers<[1], [0], [0], [1], [0, 0, 1, 1], [], []>} : vector<32x128xbf16>, vector<128x128xbf16>, vector<32x128xf32> -> vector<32x128xf32>
      %c0_13 = arith.constant 0 : index
      %c0_14 = arith.constant 0 : index
      %13 = vector.load %arg4[%c0_13, %c0_14] : memref<1x128xf32, #tpu.memory_space<vmem>>, vector<1x128xf32>
      %14 = vector.broadcast %13 : vector<1x128xf32> to vector<32x128xf32>
      %15 = arith.addf %12, %14 : vector<32x128xf32>
      %cst_15 = arith.constant 5.000000e-01 : f32
      %16 = vector.broadcast %cst_15 : f32 to vector<32x128xf32>
      %17 = arith.mulf %16, %15 : vector<32x128xf32>
      %18 = arith.mulf %15, %15 : vector<32x128xf32>
      %19 = arith.mulf %18, %15 : vector<32x128xf32>
      %cst_16 = arith.constant 4.471500e-02 : f32
      %20 = vector.broadcast %cst_16 : f32 to vector<32x128xf32>
      %21 = arith.mulf %20, %19 : vector<32x128xf32>
      %22 = arith.addf %15, %21 : vector<32x128xf32>
      %cst_17 = arith.constant 0.797884583 : f32
      %23 = vector.broadcast %cst_17 : f32 to vector<32x128xf32>
      %24 = arith.mulf %23, %22 : vector<32x128xf32>
      %25 = math.tanh %24 : vector<32x128xf32>
      %cst_18 = arith.constant 1.000000e+00 : f32
      %26 = vector.broadcast %cst_18 : f32 to vector<32x128xf32>
      %27 = arith.addf %26, %25 : vector<32x128xf32>
      %28 = arith.mulf %17, %27 : vector<32x128xf32>
      %cst_19 = arith.constant dense<0.000000e+00> : vector<32xf32>
      %29 = vector.multi_reduction <add>, %28, %cst_19 [1] : vector<32x128xf32> to vector<32xf32>
      %30 = vector.shape_cast %29 : vector<32xf32> to vector<32x1xf32>
      %cst_20 = arith.constant 1.280000e+02 : f32
      %31 = vector.broadcast %cst_20 : f32 to vector<32x1xf32>
      %32 = arith.divf %30, %31 : vector<32x1xf32>
      %33 = vector.broadcast %32 : vector<32x1xf32> to vector<32x128xf32>
      %34 = arith.subf %28, %33 : vector<32x128xf32>
      %35 = arith.mulf %34, %34 : vector<32x128xf32>
      %cst_21 = arith.constant dense<0.000000e+00> : vector<32xf32>
      %36 = vector.multi_reduction <add>, %35, %cst_21 [1] : vector<32x128xf32> to vector<32xf32>
      %37 = vector.shape_cast %36 : vector<32xf32> to vector<32x1xf32>
      %cst_22 = arith.constant 1.280000e+02 : f32
      %38 = vector.broadcast %cst_22 : f32 to vector<32x1xf32>
      %39 = arith.divf %37, %38 : vector<32x1xf32>
      %cst_23 = arith.constant 9.99999996E-13 : f32
      %40 = vector.broadcast %cst_23 : f32 to vector<32x1xf32>
      %41 = arith.addf %39, %40 : vector<32x1xf32>
      %42 = math.rsqrt %41 : vector<32x1xf32>
      %43 = vector.broadcast %42 : vector<32x1xf32> to vector<32x128xf32>
      %44 = arith.mulf %34, %43 : vector<32x128xf32>
      %c0_24 = arith.constant 0 : index
      %c0_25 = arith.constant 0 : index
      %45 = vector.load %arg5[%c0_24, %c0_25] : memref<1x128xf32, #tpu.memory_space<vmem>>, vector<1x128xf32>
      %46 = vector.broadcast %45 : vector<1x128xf32> to vector<32x128xf32>
      %47 = arith.mulf %44, %46 : vector<32x128xf32>
      %c0_26 = arith.constant 0 : index
      %c0_27 = arith.constant 0 : index
      %48 = vector.load %arg6[%c0_26, %c0_27] : memref<1x128xf32, #tpu.memory_space<vmem>>, vector<1x128xf32>
      %49 = vector.broadcast %48 : vector<1x128xf32> to vector<32x128xf32>
      %50 = arith.addf %47, %49 : vector<32x128xf32>
      %51 = arith.truncf %50 : vector<32x128xf32> to vector<32x128xbf16>
      %c0_28 = arith.constant 0 : index
      %c0_29 = arith.constant 0 : index
      %52 = vector.load %arg10[%c0_28, %c0_29] : memref<32x128xbf16, #tpu.memory_space<vmem>>, vector<32x128xbf16>
      tpu.vector_store %arg10[%c0_28, %c0_29], %51 {strides = array<i32>} : memref<32x128xbf16, #tpu.memory_space<vmem>>, vector<32x128xbf16>,
    } else {
    }
    %c0 = arith.constant 0 : index
    %c0_1 = arith.constant 0 : index
    %3 = vector.load %arg10[%c0, %c0_1] : memref<32x128xbf16, #tpu.memory_space<vmem>>, vector<32x128xbf16>
    %c0_2 = arith.constant 0 : index
    %c0_3 = arith.constant 0 : index
    %4 = vector.load %arg7[%c0_2, %c0_3] : memref<128x384xbf16, #tpu.memory_space<vmem>>, vector<128x384xbf16>
    %cst = arith.constant dense<0.000000e+00> : vector<32x384xf32>
    %5 = tpu.matmul %3, %4, %cst {dimension_numbers = #tpu.dot_dimension_numbers<[1], [0], [0], [1], [0, 0, 1, 1], [], []>} : vector<32x128xbf16>, vector<128x384xbf16>, vector<32x384xf32> -> vector<32x384xf32>
    %c0_4 = arith.constant 0 : index
    %c0_5 = arith.constant 0 : index
    %6 = vector.load %arg8[%c0_4, %c0_5] : memref<1x384xf32, #tpu.memory_space<vmem>>, vector<1x384xf32>
    %7 = vector.broadcast %6 : vector<1x384xf32> to vector<32x384xf32>
    %8 = arith.addf %5, %7 : vector<32x384xf32>
    %c0_6 = arith.constant 0 : index
    %c0_7 = arith.constant 0 : index
    %9 = vector.load %arg9[%c0_6, %c0_7] : memref<32x384xf32, #tpu.memory_space<vmem>>, vector<32x384xf32>
    tpu.vector_store %arg9[%c0_6, %c0_7], %8 {strides = array<i32>} : memref<32x384xf32, #tpu.memory_space<vmem>>, vector<32x384xf32>,
    return
  }
  func.func @transform_0(%arg0: i32, %arg1: i32) -> (i32, i32) {
    %c0_i32 = arith.constant 0 : i32
    %c0_i32_0 = arith.constant 0 : i32
    return %arg0, %c0_i32 : i32, i32
  }
  func.func @transform_1(%arg0: i32, %arg1: i32) -> (i32, i32) {
    %c0_i32 = arith.constant 0 : i32
    %c0_i32_0 = arith.constant 0 : i32
    %c0_i32_1 = arith.constant 0 : i32
    return %c0_i32, %c0_i32_0 : i32, i32
  }
  func.func @transform_2(%arg0: i32, %arg1: i32) -> (i32, i32) {
    %c0_i32 = arith.constant 0 : i32
    %c0_i32_0 = arith.constant 0 : i32
    %c0_i32_1 = arith.constant 0 : i32
    return %c0_i32, %c0_i32_0 : i32, i32
  }
  func.func @transform_3(%arg0: i32, %arg1: i32) -> (i32, i32) {
    %c0_i32 = arith.constant 0 : i32
    %c0_i32_0 = arith.constant 0 : i32
    %c0_i32_1 = arith.constant 0 : i32
    return %c0_i32, %c0_i32_0 : i32, i32
  }
  func.func @transform_4(%arg0: i32, %arg1: i32) -> (i32, i32) {
    %c0_i32 = arith.constant 0 : i32
    %c0_i32_0 = arith.constant 0 : i32
    %c0_i32_1 = arith.constant 0 : i32
    return %c0_i32, %c0_i32_0 : i32, i32
  }
  func.func @transform_5(%arg0: i32, %arg1: i32) -> (i32, i32) {
    %c0_i32 = arith.constant 0 : i32
    %c0_i32_0 = arith.constant 0 : i32
    return %c0_i32, %arg1 : i32, i32
  }
  func.func @transform_6(%arg0: i32, %arg1: i32) -> (i32, i32) {
    %c0_i32 = arith.constant 0 : i32
    %c0_i32_0 = arith.constant 0 : i32
    return %c0_i32, %arg1 : i32, i32
  }
  func.func @transform_7(%arg0: i32, %arg1: i32) -> (i32, i32) {
    %c0_i32 = arith.constant 0 : i32
    return %arg0, %arg1 : i32, i32
  }
}

</mosaic_0001>

<bundles_post_ra>
// kernel: _bert_lm_head_forward.1
= control target key start
LH: loop header
LB: loop body
LE: loop exit
PB: predicated region body
PF: predicated region fallthrough
CT: control target
= control target key end

     0   :  { %12 = vsyncpa [#allocation4], 0  ;;  %s993_s0 = inlined_call_operand.vmem [shape: bf16[32,128], index: 0, kind: input, shape index: {}]   ;;  %s994_s1 = inlined_call_operand.hbm [shape: bf16[128,128], index: 1, kind: input, shape index: {}]   ;;  %s995_s2 = inlined_call_operand.vmem [shape: f32[1,128], index: 2, kind: input, shape index: {}]   ;;  %s996_s3 = inlined_call_operand.vmem [shape: f32[1,128], index: 3, kind: input, shape index: {}]   ;;  %s997_s4 = inlined_call_operand.vmem [shape: f32[1,128], index: 4, kind: input, shape index: {}]   ;;  %s998_s5 = inlined_call_operand.hbm [shape: bf16[128,384], index: 5, kind: input, shape index: {}]   ;;  %s999_s6 = inlined_call_operand.vmem [shape: f32[1,384], index: 6, kind: input, shape index: {}]   ;;  %s1000_s7 = inlined_call_operand.hbm [shape: f32[32,384], index: 7, kind: output, shape index: {}]  }
   0x1   :  { %13 = vsyncpa [#allocation7], 0 }
   0x2   :  { %14 = vsyncpa [#allocation5], 0  ;;  %s21_s26 = sshll.u32 %s994_s1, 4  ;;  %s886_s27 = smov [#allocation3]   ;;  %s22_s26 = int_to_ptr.hbm [resolvable:$true] %s21_s26 }
   0x3   :  { %s23_s28 = sshll.u32 %s886_s27, 4  ;;  %s40_s8 = sshll.u32 %s998_s5, 4  ;;  %s24_s28 = int_to_ptr.vmem [resolvable:$true] %s23_s28  ;;  %s41_s8 = int_to_ptr.hbm [resolvable:$true] %s40_s8 }
   0x4   :  { %s887_s9 = smov 64   ;;  %s888_s10 = smov 4  }
   0x5   :  { %29 = dma.hbm_to_vmem [thread:$0]  %s22_s26, 1024, %s24_s28, [#allocation4], %s887_s9, %s887_s9, %s888_s10  }
   0x6   :  { %s889_s11 = smov [#allocation6]   ;;  %s890_s13 = smov 192  }
   0x7   :  { %s42_s12 = sshll.u32 %s889_s11, 4  ;;  %s891_s14 = smov 12   ;;  %s43_s12 = int_to_ptr.vmem [resolvable:$true] %s42_s12 }
   0x8   :  { %48 = dma.hbm_to_vmem [thread:$0]  %s41_s8, 3072, %s43_s12, [#allocation7], %s890_s13, %s890_s13, %s891_s14  }
   0x9   :  { %880 = dma.done.wait [#allocation4], 1024  }
   0xa   :  { %881 = vsyncadd [#allocation4], 4294966272 }
   0xb   :  { %882 = dma.done.wait [#allocation7], 3072  }
   0xc   :  { %883 = vsyncadd [#allocation7], 4294964224  ;;  %v739_v0 = vld [vmem:[#allocation3 + $0x38] sm:$0xff]  ;;  %v738_v1 = vld [vmem:[#allocation3 + $0x30] sm:$0xff]  ;;  %v892_v55 = vmov 128.0   ;;  %s572_s24 = sshll.u32 %s1000_s7, 4  ;;  %s573_s24 = int_to_ptr.hbm [resolvable:$true] %s572_s24 }
   0xd   :  { %147 = vmatpush.bf16.msra.mxu0 %v739_v0  ;;  %v737_v2 = vld [vmem:[#allocation3 + $0x28] sm:$0xff]  ;;  %v736_v3 = vld [vmem:[#allocation3 + $0x20] sm:$0xff]  ;;  %v735_v4 = vld [vmem:[#allocation3 + $0x18] sm:$0xff]  ;;  %s894_s25 = smov 384   ;;  %s895_s26 = smov 24  }
   0xe   :  { %v734_v5 = vld [vmem:[#allocation3 + $0x10] sm:$0xff]  ;;  %v733_v6 = vld [vmem:[#allocation3 + $0x8] sm:$0xff]  ;;  %v732_v7 = vld [vmem:[#allocation3] sm:$0xff] }
   0xf   :  { %v730_v8 = vld [vmem:[%s993_s0] sm:$0xff]  ;;  %v731_v9 = vld [vmem:[%s993_s0 + $0x8] sm:$0xff] }
  0x10   :  { %v787_v10 = vld [vmem:[%s995_s2] ss:$0 sm:$0xff] }
  0x11   :  { %148 = vmatpush.bf16.msra.mxu0 %v738_v1 }
  0x15   :  { %149 = vmatpush.bf16.msra.mxu0 %v737_v2 }
  0x19   :  { %150 = vmatpush.bf16.msra.mxu0 %v736_v3 }
  0x1d   :  { %151 = vmatpush.bf16.msra.mxu0 %v735_v4 }
  0x21   :  { %152 = vmatpush.bf16.msra.mxu0 %v734_v5 }
  0x25   :  { %153 = vmatpush.bf16.msra.mxu0 %v733_v6 }
  0x29   :  { %154 = vmatpush.bf16.msra.mxu0 %v732_v7 }
  0x2c   :  { %155 = vmatmul.bf16.vlgmr.msra.gmra.mxu0 %v730_v8 }
  0x3c   :  { %160 = vmatmul.bf16.gmra.mxu0 %v731_v9 }
  0xa9   :  { %v156_v11 = vpop.f32.mrf.mxu0 }
  0xaa   :  { %v157_v12 = vadd.f32 %v787_v10, %v156_v11 }
  0xac   :  { %v170_v13 = vmul.f32 %v157_v12, %v157_v12  ;;  %v166_v29 = vmul.f32 0.5, %v157_v12 }
  0xae   :  { %v174_v14 = vmul.f32 %v170_v13, %v157_v12 }
  0xb0   :  { %v178_v15 = vmul.f32 0.044715, %v174_v14  ;;  %v720_v14 = vld [vmem:[#allocation6 + $0xa8] sm:$0xf] }
  0xb1   :  { %v158_v16 = vpop.f32.mrf.mxu0 }
  0xb2   :  { %v159_v17 = vadd.f32 %v787_v10, %v158_v16  ;;  %v182_v18 = vadd.f32 %v178_v15, %v157_v12  ;;  %v764_v15 = vld [vmem:[#allocation6 + $0xb0] sm:$0xf0]  ;;  %v763_v16 = vld [vmem:[#allocation6 + $0xac] sm:$0xf] }
  0xb4   :  { %v171_v19 = vmul.f32 %v159_v17, %v159_v17  ;;  %v186_v20 = vmul.f32 0.7978846, %v182_v18  ;;  %v167_v40 = vmul.f32 0.5, %v159_v17  ;;  %v722_v18 = vld [vmem:[#allocation6 + $0xb4] sm:$0xf0] }
  0xb6   :  { %v175_v21 = vmul.f32 %v171_v19, %v159_v17  ;;  %790 = vtanh.f32 %v186_v20  ;;  %v728_v19 = vld [vmem:[#allocation6 + $0xb0] sm:$0xf]  ;;  %v765_v20 = vld [vmem:[#allocation6 + $0xb8] sm:$0xf0] }
  0xb8   :  { %v179_v22 = vmul.f32 0.044715, %v175_v21  ;;  %v725_v21 = vor.u32 %v763_v16, %v722_v18  ;;  %v650_v16 = vld [vmem:[#allocation6 + $0x24] sm:$0xf0]  ;;  %v747_v18 = vld [vmem:[#allocation6 + $0x28] sm:$0xf0] }
  0xb9   :  { %v161_v23 = vpop.f32.mrf.mxu0 }
  0xba   :  { %v162_v24 = vadd.f32 %v787_v10, %v161_v23  ;;  %v183_v25 = vadd.f32 %v179_v22, %v159_v17  ;;  %v721_v17 = vor.u32 %v764_v15, %v720_v14  ;;  %v729_v22 = vor.u32 %v765_v20, %v728_v19  ;;  %516 = vmatpush.bf16.msra.mxu2 %v725_v21  ;;  %v708_v23 = vld [vmem:[#allocation6 + $0x90] sm:$0xf]  ;;  %v745_v14 = vld [vmem:[#allocation6 + $0x1c] sm:$0xf] }
  0xbb   :  { %v653_v20 = vor.u32 %v745_v14, %v650_v16 }
  0xbc   :  { %v791_v26 = vpop.eup %790  ;;  %v172_v27 = vmul.f32 %v162_v24, %v162_v24  ;;  %v187_v28 = vmul.f32 0.7978846, %v183_v25  ;;  %v168_v48 = vmul.f32 0.5, %v162_v24  ;;  %497 = vmatpush.bf16.msra.mxu1 %v721_v17  ;;  %535 = vmatpush.bf16.msra.mxu3 %v729_v22  ;;  %v760_v25 = vld [vmem:[#allocation6 + $0x94] sm:$0xf] }
  0xbd   :  { %v194_v30 = vadd.f32 1.0, %v791_v26  ;;  %v656_v17 = vld [vmem:[#allocation6 + $0x20] sm:$0xf] }
  0xbe   :  { %v176_v31 = vmul.f32 %v172_v27, %v162_v24  ;;  %792 = vtanh.f32 %v187_v28  ;;  %v710_v27 = vld [vmem:[#allocation6 + $0x9c] sm:$0xf0]  ;;  %v716_v28 = vld [vmem:[#allocation6 + $0x98] sm:$0xf]  ;;  %v657_v21 = vor.u32 %v747_v18, %v656_v17 }
  0xbf   :  { %v198_v32 = vmul.f32 %v194_v30, %v166_v29  ;;  %v762_v29 = vld [vmem:[#allocation6 + $0xa0] sm:$0xf0]  ;;  %v713_v30 = vor.u32 %v760_v25, %v710_v27 }
  0xc0   :  { %v180_v33 = vmul.f32 0.044715, %v176_v31  ;;  %v717_v31 = vor.u32 %v762_v29, %v716_v28  ;;  %v742_v25 = vld [vmem:[#allocation6 + $0x4] sm:$0xf]  ;;  %v638_v29 = vld [vmem:[#allocation6 + $0xc] sm:$0xf0] }
  0xc1   :  { %v163_v34 = vpop.f32.mrf.mxu0  ;;  %202 = vadd.xlane.f32.xlu0 %v198_v32  ;;  %517 = vmatpush.bf16.msra.mxu2 %v713_v30  ;;  %v644_v30 = vld [vmem:[#allocation6 + $0x8] sm:$0xf] }
  0xc2   :  { %v164_v35 = vadd.f32 %v787_v10, %v163_v34  ;;  %v184_v36 = vadd.f32 %v180_v33, %v162_v24  ;;  %v761_v24 = vld [vmem:[#allocation6 + $0x98] sm:$0xf0]  ;;  %536 = vmatpush.bf16.msra.mxu3 %v717_v31  ;;  %v758_v33 = vld [vmem:[#allocation6 + $0x80] sm:$0xf0] }
  0xc3   :  { %v709_v26 = vor.u32 %v761_v24, %v708_v23  ;;  %v757_v34 = vld [vmem:[#allocation6 + $0x7c] sm:$0xf]  ;;  %v636_v23 = vld [vmem:[#allocation6] sm:$0xf]  ;;  %v743_v24 = vld [vmem:[#allocation6 + $0x8] sm:$0xf0] }
  0xc4   :  { %v793_v37 = vpop.eup %792  ;;  %v173_v38 = vmul.f32 %v164_v35, %v164_v35  ;;  %v188_v39 = vmul.f32 0.7978846, %v184_v36  ;;  %v169_v52 = vmul.f32 0.5, %v164_v35  ;;  %v698_v36 = vld [vmem:[#allocation6 + $0x84] sm:$0xf0]  ;;  %v637_v28 = vor.u32 %v743_v24, %v636_v23 }
  0xc5   :  { %v195_v41 = vadd.f32 1.0, %v793_v37  ;;  %498 = vmatpush.bf16.msra.mxu1 %v709_v26  ;;  %v704_v37 = vld [vmem:[#allocation6 + $0x80] sm:$0xf] }
  0xc6   :  { %v177_v42 = vmul.f32 %v173_v38, %v164_v35  ;;  %794 = vtanh.f32 %v188_v39  ;;  %v759_v38 = vld [vmem:[#allocation6 + $0x88] sm:$0xf0]  ;;  %v701_v39 = vor.u32 %v757_v34, %v698_v36 }
  0xc7   :  { %v199_v43 = vmul.f32 %v195_v41, %v167_v40  ;;  %v705_v40 = vor.u32 %v759_v38, %v704_v37  ;;  %v684_v41 = vld [vmem:[#allocation6 + $0x60] sm:$0xf] }
  0xc8   :  { %v181_v44 = vmul.f32 0.044715, %v177_v42  ;;  %518 = vmatpush.bf16.msra.mxu2 %v701_v39  ;;  %v755_v42 = vld [vmem:[#allocation6 + $0x68] sm:$0xf0] }
  0xc9   :  { %204 = vadd.xlane.f32.xlu0 %v199_v43  ;;  %537 = vmatpush.bf16.msra.mxu3 %v705_v40 }
  0xca   :  { %v185_v45 = vadd.f32 %v181_v44, %v164_v35  ;;  %v685_v44 = vor.u32 %v755_v42, %v684_v41 }
  0xcc   :  { %v795_v46 = vpop.eup %794  ;;  %v189_v47 = vmul.f32 0.7978846, %v185_v45  ;;  %v686_v45 = vld [vmem:[#allocation6 + $0x6c] sm:$0xf0] }
  0xcd   :  { %v196_v49 = vadd.f32 1.0, %v795_v46  ;;  %v692_v46 = vld [vmem:[#allocation6 + $0x68] sm:$0xf] }
  0xce   :  { %796 = vtanh.f32 %v189_v47  ;;  %v756_v47 = vld [vmem:[#allocation6 + $0x70] sm:$0xf0] }
  0xcf   :  { %v200_v50 = vmul.f32 %v196_v49, %v168_v48  ;;  %798 = vrcp.f32 %v892_v55  ;;  %v693_v49 = vor.u32 %v756_v47, %v692_v46  ;;  %v680_v55 = vld [vmem:[#allocation6 + $0x50] sm:$0xf] }
  0xd1   :  { %206 = vadd.xlane.f32.xlu1 %v200_v50  ;;  %538 = vmatpush.bf16.msra.mxu3 %v693_v49 }
  0xd4   :  { %v797_v51 = vpop.eup %796 }
  0xd5   :  { %v197_v53 = vadd.f32 1.0, %v797_v51  ;;  %v799_v56 = vpop.eup %798  ;;  %v752_v51 = vld [vmem:[#allocation6 + $0x50] sm:$0xf0] }
  0xd6   :  { %v211_v57 = vmul.f32 128.0, %v799_v56  ;;  %vm215_vm0 = vweird.f32 %v799_v56 }
  0xd7   :  { %v201_v54 = vmul.f32 %v197_v53, %v169_v52  ;;  %v751_v52 = vld [vmem:[#allocation6 + $0x4c] sm:$0xf] }
  0xd8   :  { %v212_v58 = vsub.f32 1.0, %v211_v57 }
  0xd9   :  { %208 = vadd.xlane.f32.xlu1 %v201_v54 }
  0xda   :  { %v213_v59 = vmul.f32 %v799_v56, %v212_v58 }
  0xdc   :  { %v214_v60 = vadd.f32 %v799_v56, %v213_v59 }
  0xde   :  { %v951_v61 = vsel %vm215_vm0, %v799_v56, %v214_v60  ;;  %v753_v56 = vld [vmem:[#allocation6 + $0x58] sm:$0xf0] }
  0xdf   :  { %v681_v59 = vor.u32 %v753_v56, %v680_v55 }
  0xe1   :  { %539 = vmatpush.bf16.msra.mxu3 %v681_v59 }
 0x134   :  { %v203_v62 = vpop.xlane.xlu0 %202 }
 0x135   :  { %v217_v63 = vmul.f32 %v951_v61, %v203_v62  ;;  %v660_v62 = vld [vmem:[#allocation6 + $0x30] sm:$0xf] }
 0x137   :  { %v954_v0 = vsub.f32 %v198_v32, %v217_v63  ;;  %v696_v32 = vld [vmem:[#allocation6 + $0x78] sm:$0xf]  ;;  %v749_v63 = vld [vmem:[#allocation6 + $0x38] sm:$0xf0] }
 0x138   :  { %v697_v35 = vor.u32 %v758_v33, %v696_v32  ;;  %v641_v32 = vor.u32 %v742_v25, %v638_v29  ;;  %v744_v33 = vld [vmem:[#allocation6 + $0x10] sm:$0xf0] }
 0x139   :  { %v225_v1 = vmul.f32 %v954_v0, %v954_v0  ;;  %v645_v34 = vor.u32 %v744_v33, %v644_v30 }
 0x13a   :  { %499 = vmatpush.bf16.msra.mxu1 %v697_v35 }
 0x13b   :  { %229 = vadd.xlane.f32.xlu2 %v225_v1  ;;  %v748_v1 = vld [vmem:[#allocation6 + $0x34] sm:$0xf] }
 0x13c   :  { %v205_v2 = vpop.xlane.xlu0 %204 }
 0x13d   :  { %v218_v3 = vmul.f32 %v951_v61, %v205_v2 }
 0x13e   :  { %500 = vmatpush.bf16.msra.mxu1 %v685_v44 }
 0x13f   :  { %v959_v4 = vsub.f32 %v199_v43, %v218_v3  ;;  %v754_v43 = vld [vmem:[#allocation6 + $0x64] sm:$0xf]  ;;  %v661_v3 = vor.u32 %v749_v63, %v660_v62 }
 0x140   :  { %v689_v48 = vor.u32 %v754_v43, %v686_v45 }
 0x141   :  { %v226_v5 = vmul.f32 %v959_v4, %v959_v4 }
 0x142   :  { %519 = vmatpush.bf16.msra.mxu2 %v689_v48 }
 0x143   :  { %231 = vadd.xlane.f32.xlu2 %v226_v5  ;;  %v662_v5 = vld [vmem:[#allocation6 + $0x3c] sm:$0xf0] }
 0x144   :  { %v207_v6 = vpop.xlane.xlu1 %206 }
 0x145   :  { %v219_v7 = vmul.f32 %v951_v61, %v207_v6  ;;  %v668_v6 = vld [vmem:[#allocation6 + $0x38] sm:$0xf] }
 0x147   :  { %v964_v8 = vsub.f32 %v200_v50, %v219_v7  ;;  %v672_v50 = vld [vmem:[#allocation6 + $0x48] sm:$0xf]  ;;  %v665_v7 = vor.u32 %v748_v1, %v662_v5 }
 0x148   :  { %v673_v53 = vor.u32 %v752_v51, %v672_v50  ;;  %v788_v51 = vld [vmem:[%s996_s3] ss:$0 sm:$0xff] }
 0x149   :  { %v227_v9 = vmul.f32 %v964_v8, %v964_v8 }
 0x14a   :  { %501 = vmatpush.bf16.msra.mxu1 %v673_v53 }
 0x14b   :  { %233 = vadd.xlane.f32.xlu0 %v227_v9  ;;  %v750_v9 = vld [vmem:[#allocation6 + $0x40] sm:$0xf0] }
 0x14c   :  { %v209_v10 = vpop.xlane.xlu1 %208 }
 0x14d   :  { %v220_v11 = vmul.f32 %v951_v61, %v209_v10  ;;  %v669_v10 = vor.u32 %v750_v9, %v668_v6 }
 0x14e   :  { %502 = vmatpush.bf16.msra.mxu1 %v661_v3 }
 0x14f   :  { %v969_v12 = vsub.f32 %v201_v54, %v220_v11  ;;  %v674_v54 = vld [vmem:[#allocation6 + $0x54] sm:$0xf0]  ;;  %540 = vmatpush.bf16.msra.mxu3 %v669_v10 }
 0x150   :  { %v677_v58 = vor.u32 %v751_v52, %v674_v54  ;;  %v648_v11 = vld [vmem:[#allocation6 + $0x18] sm:$0xf] }
 0x151   :  { %v228_v13 = vmul.f32 %v969_v12, %v969_v12 }
 0x152   :  { %520 = vmatpush.bf16.msra.mxu2 %v677_v58 }
 0x153   :  { %235 = vadd.xlane.f32.xlu1 %v228_v13  ;;  %v746_v13 = vld [vmem:[#allocation6 + $0x20] sm:$0xf0]  ;;  %541 = vmatpush.bf16.msra.mxu3 %v657_v21 }
 0x154   :  { %v649_v15 = vor.u32 %v746_v13, %v648_v11 }
 0x156   :  { %521 = vmatpush.bf16.msra.mxu2 %v665_v7  ;;  %503 = vmatpush.bf16.msra.mxu1 %v649_v15 }
 0x157   :  { %542 = vmatpush.bf16.msra.mxu3 %v645_v34 }
 0x15a   :  { %522 = vmatpush.bf16.msra.mxu2 %v653_v20  ;;  %504 = vmatpush.bf16.msra.mxu1 %v637_v28 }
 0x15e   :  { %523 = vmatpush.bf16.msra.mxu2 %v641_v32 }
 0x1ae   :  { %v230_v57 = vpop.xlane.xlu2 %229 }
 0x1af   :  { %v237_v60 = vmul.f32 %v230_v57, %v951_v61 }
 0x1b1   :  { %v241_v2 = vadd.f32 1e-12, %v237_v60 }
 0x1b3   :  { %800 = vrsqrt.f32 %v241_v2  ;;  %vm251_vm2 = vweird.f32 %v241_v2 }
 0x1b6   :  { %v232_v19 = vpop.xlane.xlu2 %231 }
 0x1b7   :  { %v238_v22 = vmul.f32 %v232_v19, %v951_v61 }
 0x1b9   :  { %v801_v26 = vpop.eup %800  ;;  %v242_v27 = vadd.f32 1e-12, %v238_v22 }
 0x1ba   :  { %v246_v31 = vmul.f32 %v801_v26, %v241_v2  ;;  %vm252_vm1 = vweird.f32 %v801_v26 }
 0x1bb   :  { %802 = vrsqrt.f32 %v242_v27  ;;  %vm253_vm3 = vmor %vm251_vm2, %vm252_vm1  ;;  %vm261_vm5 = vweird.f32 %v242_v27 }
 0x1bc   :  { %v247_v35 = vmul.f32 %v801_v26, %v246_v31 }
 0x1be   :  { %v248_v36 = vmul.f32 0.5, %v247_v35  ;;  %v234_v37 = vpop.xlane.xlu0 %233 }
 0x1bf   :  { %v239_v38 = vmul.f32 %v234_v37, %v951_v61 }
 0x1c0   :  { %v249_v39 = vsub.f32 1.5, %v248_v36 }
 0x1c1   :  { %v803_v40 = vpop.eup %802  ;;  %v243_v41 = vadd.f32 1e-12, %v239_v38 }
 0x1c2   :  { %v250_v42 = vmul.f32 %v801_v26, %v249_v39  ;;  %v256_v43 = vmul.f32 %v803_v40, %v242_v27  ;;  %vm262_vm4 = vweird.f32 %v803_v40 }
 0x1c3   :  { %804 = vrsqrt.f32 %v243_v41  ;;  %vm263_vm6 = vmor %vm261_vm5, %vm262_vm4  ;;  %vm271_vm8 = vweird.f32 %v243_v41 }
 0x1c4   :  { %v257_v44 = vmul.f32 %v803_v40, %v256_v43  ;;  %v254_v45 = vsel %vm253_vm3, %v801_v26, %v250_v42 }
 0x1c5   :  { %v285_v52 = vmul.f32 %v254_v45, %v954_v0 }
 0x1c6   :  { %v258_v46 = vmul.f32 0.5, %v257_v44  ;;  %v236_v47 = vpop.xlane.xlu1 %235 }
 0x1c7   :  { %v240_v48 = vmul.f32 %v236_v47, %v951_v61  ;;  %v789_v61 = vld [vmem:[%s997_s4] ss:$0 sm:$0xff]  ;;  %v293_v58 = vmul.f32 %v788_v51, %v285_v52 }
 0x1c8   :  { %v259_v49 = vsub.f32 1.5, %v258_v46 }
 0x1c9   :  { %v805_v50 = vpop.eup %804  ;;  %v244_v53 = vadd.f32 1e-12, %v240_v48  ;;  %v301_v0 = vadd.f32 %v789_v61, %v293_v58 }
 0x1ca   :  { %v260_v54 = vmul.f32 %v803_v40, %v259_v49  ;;  %v266_v55 = vmul.f32 %v805_v50, %v243_v41  ;;  %vm272_vm7 = vweird.f32 %v805_v50 }
 0x1cb   :  { %806 = vrsqrt.f32 %v244_v53  ;;  %vm273_vm9 = vmor %vm271_vm8, %vm272_vm7  ;;  %vm281_vm11 = vweird.f32 %v244_v53 }
 0x1cc   :  { %v264_v56 = vsel %vm263_vm6, %v803_v40, %v260_v54  ;;  %v267_v57 = vmul.f32 %v805_v50, %v266_v55 }
 0x1cd   :  { %v286_v59 = vmul.f32 %v264_v56, %v959_v4 }
 0x1ce   :  { %v268_v60 = vmul.f32 0.5, %v267_v57 }
 0x1cf   :  { %v294_v62 = vmul.f32 %v788_v51, %v286_v59 }
 0x1d0   :  { %v269_v63 = vsub.f32 1.5, %v268_v60 }
 0x1d1   :  { %v807_v1 = vpop.eup %806  ;;  %v302_v2 = vadd.f32 %v789_v61, %v294_v62 }
 0x1d2   :  { %v270_v3 = vmul.f32 %v805_v50, %v269_v63  ;;  %v276_v5 = vmul.f32 %v807_v1, %v244_v53  ;;  %vm282_vm10 = vweird.f32 %v807_v1 }
 0x1d3   :  { %v769_v6 = vpack.c.bf16 %v302_v2, %v301_v0  ;;  %vm283_vm12 = vmor %vm281_vm11, %vm282_vm10 }
 0x1d4   :  { %v277_v7 = vmul.f32 %v807_v1, %v276_v5  ;;  %v274_v9 = vsel %vm273_vm9, %v805_v50, %v270_v3 }
 0x1d5   :  { %770 = vst [vmem:[#allocation2] sm:$0xff] %v769_v6   ;;  %v287_v4 = vmul.f32 %v274_v9, %v964_v8  ;;  %v349_v8 = vld [vmem:[%s999_s6] sm:$0x7]  ;;  %s893_s6 = smov [#allocation8]  }
 0x1d6   :  { %v278_v10 = vmul.f32 0.5, %v277_v7  ;;  %v351_v23 = vperm.slane %v349_v8, 0  ;;  %v353_v26 = vperm.slane %v349_v8, 2  ;;  %s570_s21 = sshll.u32 %s893_s6, 4  ;;  %s571_s21 = int_to_ptr.vmem [resolvable:$true] %s570_s21 }
 0x1d7   :  { %v295_v16 = vmul.f32 %v788_v51, %v287_v4 }
 0x1d8   :  { %v279_v11 = vsub.f32 1.5, %v278_v10 }
 0x1d9   :  { %v303_v19 = vadd.f32 %v789_v61, %v295_v16 }
 0x1da   :  { %v280_v13 = vmul.f32 %v807_v1, %v279_v11 }
 0x1dc   :  { %v284_v14 = vsel %vm283_vm12, %v807_v1, %v280_v13  ;;  %v740_v15 = vld [vmem:[#allocation2] sm:$0xff] }
 0x1dd   :  { %v288_v17 = vmul.f32 %v284_v14, %v969_v12  ;;  %505 = vmatmul.bf16.vlgmr.msra.gmra.mxu1 %v740_v15  ;;  %524 = vmatmul.bf16.vlgmr.msra.gmra.mxu2 %v740_v15  ;;  %v352_v12 = vperm.slane %v349_v8, 1 }
 0x1de   :  { %543 = vmatmul.bf16.vlgmr.msra.gmra.mxu3 %v740_v15 }
 0x1df   :  { %v296_v18 = vmul.f32 %v788_v51, %v288_v17 }
 0x1e1   :  { %v304_v20 = vadd.f32 %v789_v61, %v296_v18 }
 0x1e3   :  { %v774_v21 = vpack.c.bf16 %v304_v20, %v303_v19 }
 0x1e5   :  { %776 = vst [vmem:[#allocation2 + $0x8] sm:$0xff] %v774_v21  }
 0x1ec   :  { %v741_v22 = vld [vmem:[#allocation2 + $0x8] sm:$0xff] }
 0x1ed   :  { %510 = vmatmul.bf16.gmra.mxu1 %v741_v22  ;;  %529 = vmatmul.bf16.gmra.mxu2 %v741_v22 }
 0x1ee   :  { %548 = vmatmul.bf16.gmra.mxu3 %v741_v22 }
 0x25a   :  { %v506_v24 = vpop.f32.mrf.mxu1 }
 0x25b   :  { %v507_v25 = vadd.f32 %v506_v24, %v351_v23 }
 0x25d   :  { %554 = vst [vmem:[#allocation8] sm:$0xff] %v507_v25 }
 0x260   :  { %v525_v27 = vpop.f32.mrf.mxu2 }
 0x261   :  { %v526_v28 = vadd.f32 %v525_v27, %v352_v12  ;;  %v544_v29 = vpop.f32.mrf.mxu3 }
 0x262   :  { %v545_v30 = vadd.f32 %v544_v29, %v353_v26  ;;  %v508_v31 = vpop.f32.mrf.mxu1 }
 0x263   :  { %555 = vst [vmem:[#allocation8 + $0x8] sm:$0xff] %v526_v28  ;;  %v509_v32 = vadd.f32 %v508_v31, %v351_v23 }
 0x264   :  { %556 = vst [vmem:[#allocation8 + $0x10] sm:$0xff] %v545_v30 }
 0x265   :  { %557 = vst [vmem:[#allocation8 + $0x18] sm:$0xff] %v509_v32 }
 0x268   :  { %v527_v33 = vpop.f32.mrf.mxu2 }
 0x269   :  { %v528_v34 = vadd.f32 %v527_v33, %v352_v12  ;;  %v546_v35 = vpop.f32.mrf.mxu3 }
 0x26a   :  { %v547_v36 = vadd.f32 %v546_v35, %v353_v26  ;;  %v511_v37 = vpop.f32.mrf.mxu1 }
 0x26b   :  { %558 = vst [vmem:[#allocation8 + $0x20] sm:$0xff] %v528_v34  ;;  %v512_v38 = vadd.f32 %v511_v37, %v351_v23 }
 0x26c   :  { %559 = vst [vmem:[#allocation8 + $0x28] sm:$0xff] %v547_v36 }
 0x26d   :  { %560 = vst [vmem:[#allocation8 + $0x30] sm:$0xff] %v512_v38 }
 0x270   :  { %v530_v39 = vpop.f32.mrf.mxu2 }
 0x271   :  { %v531_v40 = vadd.f32 %v530_v39, %v352_v12  ;;  %v549_v41 = vpop.f32.mrf.mxu3 }
 0x272   :  { %v550_v42 = vadd.f32 %v549_v41, %v353_v26  ;;  %v513_v43 = vpop.f32.mrf.mxu1 }
 0x273   :  { %561 = vst [vmem:[#allocation8 + $0x38] sm:$0xff] %v531_v40  ;;  %v514_v44 = vadd.f32 %v513_v43, %v351_v23 }
 0x274   :  { %562 = vst [vmem:[#allocation8 + $0x40] sm:$0xff] %v550_v42 }
 0x275   :  { %563 = vst [vmem:[#allocation8 + $0x48] sm:$0xff] %v514_v44 }
 0x278   :  { %v532_v45 = vpop.f32.mrf.mxu2 }
 0x279   :  { %v533_v46 = vadd.f32 %v532_v45, %v352_v12  ;;  %v551_v47 = vpop.f32.mrf.mxu3 }
 0x27a   :  { %v552_v48 = vadd.f32 %v551_v47, %v353_v26 }
 0x27b   :  { %564 = vst [vmem:[#allocation8 + $0x50] sm:$0xff] %v533_v46 }
 0x27c   :  { %565 = vst [vmem:[#allocation8 + $0x58] sm:$0xff] %v552_v48 }
 0x27d   :  { %578 = dma.vmem_to_hbm [thread:$0]  %s571_s21, 1536, %s573_s24, [#allocation5], %s894_s25, %s894_s25, %s895_s26  }
 0x27e   :  { %884 = dma.done.wait [#allocation5], 1536  }
 0x27f   :  { %885 = vsyncadd [#allocation5], 4294965760 }
 0x280   :  { %583 = vsyncpa [#allocation4], 1 }
 0x281   :  { %584 = vsyncpa [#allocation7], 1 }
 0x282   :  { %585 = vsyncpa [#allocation5], 1 }

</bundles_post_ra>
